<compile_context>
chip_gen: v7x
topology: tpu7x:2x2x1
jax: 0.10.0
libtpu: 0.0.40
codegen_flags: <defaults>
</compile_context>

<pallas_src>
import functools

import jax
import jax.numpy as jnp
import numpy as np
from jax.experimental import pallas as pl
from jax.experimental.pallas import tpu as pltpu

EPS = 1e-5   # PyTorch InstanceNorm2d default eps (affine=False).
LANE = 1     # lane axis of the in-kernel (rows, H*W) layout.


def _conv3x3_folded(x, w_big, xcat_ref, col_first, col_last, row_first,
                    row_last, img_w):
    """3x3 conv with ReflectionPad2d(1) on a lane-dense (R, H*W) slab.

    x:        (R, P) f32, flat row-major spatial (p = h*W + w), R = pack*C_in.
    w_big:    (3*R, 3*R) folded weights (row block = kh, col block = kw,
              inner layout = (packed image, channel)); bf16 or f32.
    xcat_ref: (3*R, P) f32 VMEM scratch used to assemble the tap slab.
    Returns (R, P) f32.
    """
    R, P = x.shape

    # Horizontal taps with reflection at w = 0 / w = W-1 (rolls ride the XLU).
    x_from_left = pltpu.roll(x, shift=1, axis=LANE)       # value at p <- p-1
    x_from_right = pltpu.roll(x, shift=P - 1, axis=LANE)  # value at p <- p+1
    xcat_ref[0:R, :] = jnp.where(col_first, x_from_right, x_from_left)  # dw=-1
    xcat_ref[R:2 * R, :] = x                                            # dw= 0
    xcat_ref[2 * R:3 * R, :] = jnp.where(col_last, x_from_left, x_from_right)

    # Single MXU matmul: (3R, 3R) @ (3R, P), f32 accumulation.
    x_cat = xcat_ref[...].astype(w_big.dtype)
    z_all = jnp.dot(w_big, x_cat, preferred_element_type=jnp.float32)

    r_out = z_all.shape[0] // 3
    z_m1 = z_all[0:r_out]               # partial sum for dh = -1 (source row)
    z_0 = z_all[r_out:2 * r_out]        # dh =  0
    z_p1 = z_all[2 * r_out:3 * r_out]   # dh = +1

    # Vertical combine with reflection at h = 0 / h = H-1, accumulated in
    # place so at most two rolled partials are live at a time.
    y = z_0
    up = pltpu.roll(z_m1, shift=img_w, axis=LANE)       # value at p <- p-W
    dn = pltpu.roll(z_m1, shift=P - img_w, axis=LANE)   # value at p <- p+W
    y = y + jnp.where(row_first, dn, up)
    up = pltpu.roll(z_p1, shift=img_w, axis=LANE)
    dn = pltpu.roll(z_p1, shift=P - img_w, axis=LANE)
    y = y + jnp.where(row_last, up, dn)
    return y


def _instance_norm(a, inv_p):
    # Per-row (= per image-channel) stats over the lane axis, all in f32.
    # Single-pass var = E[x^2] - mu^2 (clamped); rsqrt rides the EUP.
    s1 = jnp.sum(a, axis=-1, keepdims=True)
    s2 = jnp.sum(a * a, axis=-1, keepdims=True)
    mu = s1 * inv_p
    var = jnp.maximum(s2 * inv_p - mu * mu, 0.0)
    return (a - mu) * jax.lax.rsqrt(var + EPS)


def res_block_kernel(x_ref, w1_ref, w2_ref, o_ref, xcat_ref, *, img_w):
    P = x_ref.shape[2]
    x = x_ref[0]  # (R, P) lane-dense slab, R = pack * C.

    # Reflection-pad boundary masks at (1, P); broadcast over rows/sublanes.
    idx = jax.lax.broadcasted_iota(jnp.int32, (1, P), 1)
    col = idx % img_w
    col_first = col == 0
    col_last = col == img_w - 1
    row_first = idx < img_w
    row_last = idx >= P - img_w
    inv_p = jnp.float32(1.0 / P)

    h = _conv3x3_folded(x, w1_ref[...], xcat_ref, col_first, col_last,
                        row_first, row_last, img_w)
    h = jnp.maximum(_instance_norm(h, inv_p), 0.0)   # InstanceNorm + ReLU
    h = _conv3x3_folded(h, w2_ref[...], xcat_ref, col_first, col_last,
                        row_first, row_last, img_w)
    h = _instance_norm(h, inv_p)

    o_ref[0] = (x + h).astype(o_ref.dtype)


def _fold_weights(w, pack):
    """(C_out, C_in, 3, 3) -> (3*pack*C_out, 3*pack*C_in) folded-tap matrix.

    Row block e = kh, column block d = kw; within each block the layout is
    (packed image, channel), block-diagonal over the packed images.
    """
    c_out, c_in = w.shape[0], w.shape[1]
    wt = jnp.transpose(w, (2, 0, 3, 1))   # (kh, C_out, kw, C_in)
    if pack == 1:
        return wt.reshape(3 * c_out, 3 * c_in)
    eye = jnp.eye(pack, dtype=w.dtype)
    wbd = jnp.einsum("eodc,ji->ejodic", wt, eye)   # block-diag over images
    return wbd.reshape(3 * pack * c_out, 3 * pack * c_in)


@functools.partial(jax.jit, static_argnames=("mxu_dtype",))
def res_block_forward(x, w1, b1, w2, b2, *, mxu_dtype=jnp.bfloat16):
    # Conv bias followed by InstanceNorm2d(affine=False) is exactly cancelled
    # by the per-channel mean subtraction -> biases never reach the kernel.
    del b1, b2
    N, C, H, W = x.shape
    P = H * W

    # Pack 2 images per grid step along sublanes when it fills vregs AND still
    # leaves >= 2 grid steps (keeps both v7x TensorCores busy).
    pack = 2 if (N % 2 == 0 and N // 2 >= 2) else 1
    G = N // pack
    R = pack * C

    x2 = x.reshape(G, R, P)                               # lane-dense layout
    w1f = _fold_weights(w1, pack).astype(mxu_dtype)       # cast once, wrapper
    w2f = _fold_weights(w2, pack).astype(mxu_dtype)

    kernel = functools.partial(res_block_kernel, img_w=W)

    out = pl.pallas_call(
        kernel,
        out_shape=jax.ShapeDtypeStruct((G, R, P), x.dtype),
        grid_spec=pltpu.PrefetchScalarGridSpec(
            num_scalar_prefetch=0,
            grid=(G,),
            in_specs=[
                pl.BlockSpec((1, R, P), lambda n: (n, 0, 0)),
                pl.BlockSpec((3 * R, 3 * R), lambda n: (0, 0)),
                pl.BlockSpec((3 * R, 3 * R), lambda n: (0, 0)),
            ],
            out_specs=pl.BlockSpec((1, R, P), lambda n: (n, 0, 0)),
            scratch_shapes=[pltpu.VMEM((3 * R, P), jnp.float32)],
        ),
        compiler_params=pltpu.CompilerParams(
            dimension_semantics=("parallel",),
            vmem_limit_bytes=32 * 1024 * 1024,
        ),
    )(x2, w1f, w2f)
    return out.reshape(N, C, H, W)


def res_block_ref(x, w1, b1, w2, b2):
    # Pure-JAX reference of the PyTorch module (biases included, to verify
    # the InstanceNorm cancellation used by the kernel).
    def refl_pad(a):
        return jnp.pad(a, ((0, 0), (0, 0), (1, 1), (1, 1)), mode="reflect")

    def conv(a, w, b):
        y = jax.lax.conv_general_dilated(
            refl_pad(a), w, window_strides=(1, 1), padding="VALID",
            dimension_numbers=("NCHW", "OIHW", "NCHW"),
            precision=jax.lax.Precision.HIGHEST)
        return y + b[None, :, None, None]

    def inorm(a):
        mu = jnp.mean(a, axis=(2, 3), keepdims=True)
        var = jnp.mean((a - mu) ** 2, axis=(2, 3), keepdims=True)
        return (a - mu) / jnp.sqrt(var + EPS)

    h = jax.nn.relu(inorm(conv(x, w1, b1)))
    h = inorm(conv(h, w2, b2))
    return x + h


if __name__ == "__main__":
    key = jax.random.PRNGKey(0)
    N, C, H, W = 2, 4, 16, 16
    kx, k1, k2, k3, k4, kx4 = jax.random.split(key, 6)

    x = jax.random.normal(kx, (N, C, H, W), jnp.float32)
    # Deterministic Conv2d-style init (uniform in +-1/sqrt(fan_in)).
    fan_in = C * 3 * 3
    bound = 1.0 / (fan_in ** 0.5)
    w1 = jax.random.uniform(k1, (C, C, 3, 3), jnp.float32, -bound, bound)
    b1 = jax.random.uniform(k2, (C,), jnp.float32, -bound, bound)
    w2 = jax.random.uniform(k3, (C, C, 3, 3), jnp.float32, -bound, bound)
    b2 = jax.random.uniform(k4, (C,), jnp.float32, -bound, bound)

    # N=2 -> unpacked path, grid=(2,) so both v7x TensorCores get a block.
    out = jax.block_until_ready(res_block_forward(x, w1, b1, w2, b2))
    out_f32 = jax.block_until_ready(
        res_block_forward(x, w1, b1, w2, b2, mxu_dtype=jnp.float32))
    ref = jax.block_until_ready(res_block_ref(x, w1, b1, w2, b2))

    assert out.shape == (N, C, H, W) and out.dtype == jnp.float32
    # Exact-dtype path: tight tolerance.
    np.testing.assert_allclose(np.asarray(out_f32), np.asarray(ref),
                               rtol=5e-3, atol=5e-3)
    # Default bf16-MXU-operand path: operands are rounded to 8 mantissa bits
    # (accumulation + stats stay f32), so a 2e-2 envelope is ample.
    np.testing.assert_allclose(np.asarray(out), np.asarray(ref),
                               rtol=2e-2, atol=2e-2)

    # N=4 exercises the 2-image sublane-packing path (still grid=(2,)).
    x4 = jax.random.normal(kx4, (4, C, H, W), jnp.float32)
    out4 = jax.block_until_ready(
        res_block_forward(x4, w1, b1, w2, b2, mxu_dtype=jnp.float32))
    ref4 = jax.block_until_ready(res_block_ref(x4, w1, b1, w2, b2))
    np.testing.assert_allclose(np.asarray(out4), np.asarray(ref4),
                               rtol=5e-3, atol=5e-3)

    print("KERNEL_OK")
</pallas_src>

<mosaic_0001>
module attributes {stable_mosaic.version = 11 : i64} {
  func.func @res_block_kernel(%arg0: i32, %arg1: memref<1x4x256xf32, #tpu.memory_space<vmem>>, %arg2: memref<12x12xbf16, #tpu.memory_space<vmem>>, %arg3: memref<12x12xbf16, #tpu.memory_space<vmem>>, %arg4: memref<1x4x256xf32, #tpu.memory_space<vmem>>, %arg5: memref<12x256xf32, #tpu.memory_space<vmem>>) attributes {dimension_semantics = [#tpu.dimension_semantics<parallel>], iteration_bounds = array<i64: 2>, scalar_prefetch = 0 : i64, scratch_operands = 1 : i64, tpu.core_type = #tpu.core_type<tc>, window_params = [{transform_indices = @transform_0, window_bounds = array<i64: 1, 4, 256>}, {pipeline_mode = #tpu.pipeline_mode<synchronous>, transform_indices = @transform_1, window_bounds = array<i64: 12, 12>}, {pipeline_mode = #tpu.pipeline_mode<synchronous>, transform_indices = @transform_2, window_bounds = array<i64: 12, 12>}, {transform_indices = @transform_3, window_bounds = array<i64: 1, 4, 256>}]} {
    %c0 = arith.constant 0 : index
    %c0_0 = arith.constant 0 : index
    %c0_1 = arith.constant 0 : index
    %0 = vector.load %arg1[%c0, %c0_0, %c0_1] : memref<1x4x256xf32, #tpu.memory_space<vmem>>, vector<1x4x256xf32>
    %1 = vector.shape_cast %0 : vector<1x4x256xf32> to vector<4x256xf32>
    %2 = tpu.iota {dimensions = array<i32: 1>} : vector<1x256xi32>
    %c16_i32 = arith.constant 16 : i32
    %c0_i32 = arith.constant 0 : i32
    %3 = arith.cmpi eq, %c16_i32, %c0_i32 : i32
    %c1_i32 = arith.constant 1 : i32
    %4 = arith.select %3, %c1_i32, %c16_i32 : i32
    %5 = vector.broadcast %4 : i32 to vector<1x256xi32>
    %6 = arith.remsi %2, %5 : vector<1x256xi32>
    %c0_i32_2 = arith.constant 0 : i32
    %7 = vector.broadcast %c0_i32_2 : i32 to vector<1x256xi32>
    %8 = arith.cmpi ne, %6, %7 : vector<1x256xi32>
    %c0_i32_3 = arith.constant 0 : i32
    %9 = vector.broadcast %c0_i32_3 : i32 to vector<1x256xi32>
    %10 = arith.cmpi slt, %6, %9 : vector<1x256xi32>
    %c0_i32_4 = arith.constant 0 : i32
    %11 = arith.cmpi slt, %4, %c0_i32_4 : i32
    %12 = vector.broadcast %11 : i1 to vector<1x256xi1>
    %13 = vector.broadcast %12 : vector<1x256xi1> to vector<1x256xi1>
    %14 = arith.xori %10, %13 : vector<1x256xi1>
    %15 = arith.andi %14, %8 : vector<1x256xi1>
    %16 = vector.broadcast %4 : i32 to vector<1x256xi32>
    %17 = arith.addi %6, %16 : vector<1x256xi32>
    %18 = arith.select %15, %17, %6 : vector<1x256xi1>, vector<1x256xi32>
    %c0_i32_5 = arith.constant 0 : i32
    %19 = vector.broadcast %c0_i32_5 : i32 to vector<1x256xi32>
    %20 = arith.cmpi eq, %18, %19 : vector<1x256xi32>
    %c15_i32 = arith.constant 15 : i32
    %21 = vector.broadcast %c15_i32 : i32 to vector<1x256xi32>
    %22 = arith.cmpi eq, %18, %21 : vector<1x256xi32>
    %c16_i32_6 = arith.constant 16 : i32
    %23 = vector.broadcast %c16_i32_6 : i32 to vector<1x256xi32>
    %24 = arith.cmpi slt, %2, %23 : vector<1x256xi32>
    %c240_i32 = arith.constant 240 : i32
    %25 = vector.broadcast %c240_i32 : i32 to vector<1x256xi32>
    %26 = arith.cmpi sge, %2, %25 : vector<1x256xi32>
    %c0_7 = arith.constant 0 : index
    %c0_8 = arith.constant 0 : index
    %27 = vector.load %arg2[%c0_7, %c0_8] : memref<12x12xbf16, #tpu.memory_space<vmem>>, vector<12x12xbf16>
    %c1_i32_9 = arith.constant 1 : i32
    %28 = tpu.dynamic_rotate %1 by %c1_i32_9 dim 1 : vector<4x256xf32>, i32 -> vector<4x256xf32>
    %c255_i32 = arith.constant 255 : i32
    %29 = tpu.dynamic_rotate %1 by %c255_i32 dim 1 : vector<4x256xf32>, i32 -> vector<4x256xf32>
    %30 = vector.shape_cast %20 : vector<1x256xi1> to vector<1x256xi1>
    %31 = vector.broadcast %30 : vector<1x256xi1> to vector<4x256xi1>
    %32 = arith.select %31, %29, %28 : vector<4x256xi1>, vector<4x256xf32>
    %c0_10 = arith.constant 0 : index
    %c0_11 = arith.constant 0 : index
    %33 = vector.load %arg5[%c0_10, %c0_11] : memref<12x256xf32, #tpu.memory_space<vmem>>, vector<4x256xf32>
    tpu.vector_store %arg5[%c0_10, %c0_11], %32 {strides = array<i32>} : memref<12x256xf32, #tpu.memory_space<vmem>>, vector<4x256xf32>,
    %c4 = arith.constant 4 : index
    %c0_12 = arith.constant 0 : index
    %34 = vector.load %arg5[%c4, %c0_12] : memref<12x256xf32, #tpu.memory_space<vmem>>, vector<4x256xf32>
    tpu.vector_store %arg5[%c4, %c0_12], %1 {strides = array<i32>} : memref<12x256xf32, #tpu.memory_space<vmem>>, vector<4x256xf32>,
    %35 = vector.shape_cast %22 : vector<1x256xi1> to vector<1x256xi1>
    %36 = vector.broadcast %35 : vector<1x256xi1> to vector<4x256xi1>
    %37 = arith.select %36, %28, %29 : vector<4x256xi1>, vector<4x256xf32>
    %c8 = arith.constant 8 : index
    %c0_13 = arith.constant 0 : index
    %38 = vector.load %arg5[%c8, %c0_13] : memref<12x256xf32, #tpu.memory_space<vmem>>, vector<4x256xf32>
    tpu.vector_store %arg5[%c8, %c0_13], %37 {strides = array<i32>} : memref<12x256xf32, #tpu.memory_space<vmem>>, vector<4x256xf32>,
    %c0_14 = arith.constant 0 : index
    %c0_15 = arith.constant 0 : index
    %39 = vector.load %arg5[%c0_14, %c0_15] : memref<12x256xf32, #tpu.memory_space<vmem>>, vector<12x256xf32>
    %40 = arith.truncf %39 : vector<12x256xf32> to vector<12x256xbf16>
    %cst = arith.constant dense<0.000000e+00> : vector<12x256xf32>
    %41 = tpu.matmul %27, %40, %cst {dimension_numbers = #tpu.dot_dimension_numbers<[1], [0], [0], [1], [0, 0, 1, 1], [], []>} : vector<12x12xbf16>, vector<12x256xbf16>, vector<12x256xf32> -> vector<12x256xf32>
    %42 = vector.extract_strided_slice %41 {offsets = [0, 0], sizes = [4, 256], strides = [1, 1]} : vector<12x256xf32> to vector<4x256xf32>
    %43 = vector.extract_strided_slice %41 {offsets = [4, 0], sizes = [4, 256], strides = [1, 1]} : vector<12x256xf32> to vector<4x256xf32>
    %44 = vector.extract_strided_slice %41 {offsets = [8, 0], sizes = [4, 256], strides = [1, 1]} : vector<12x256xf32> to vector<4x256xf32>
    %c16_i32_16 = arith.constant 16 : i32
    %45 = tpu.dynamic_rotate %42 by %c16_i32_16 dim 1 : vector<4x256xf32>, i32 -> vector<4x256xf32>
    %c240_i32_17 = arith.constant 240 : i32
    %46 = tpu.dynamic_rotate %42 by %c240_i32_17 dim 1 : vector<4x256xf32>, i32 -> vector<4x256xf32>
    %47 = vector.shape_cast %24 : vector<1x256xi1> to vector<1x256xi1>
    %48 = vector.broadcast %47 : vector<1x256xi1> to vector<4x256xi1>
    %49 = arith.select %48, %46, %45 : vector<4x256xi1>, vector<4x256xf32>
    %50 = arith.addf %43, %49 : vector<4x256xf32>
    %c16_i32_18 = arith.constant 16 : i32
    %51 = tpu.dynamic_rotate %44 by %c16_i32_18 dim 1 : vector<4x256xf32>, i32 -> vector<4x256xf32>
    %c240_i32_19 = arith.constant 240 : i32
    %52 = tpu.dynamic_rotate %44 by %c240_i32_19 dim 1 : vector<4x256xf32>, i32 -> vector<4x256xf32>
    %53 = vector.shape_cast %26 : vector<1x256xi1> to vector<1x256xi1>
    %54 = vector.broadcast %53 : vector<1x256xi1> to vector<4x256xi1>
    %55 = arith.select %54, %51, %52 : vector<4x256xi1>, vector<4x256xf32>
    %56 = arith.addf %50, %55 : vector<4x256xf32>
    %cst_20 = arith.constant dense<0.000000e+00> : vector<4xf32>
    %57 = vector.multi_reduction <add>, %56, %cst_20 [1] : vector<4x256xf32> to vector<4xf32>
    %58 = vector.shape_cast %57 : vector<4xf32> to vector<4x1xf32>
    %59 = arith.mulf %56, %56 : vector<4x256xf32>
    %cst_21 = arith.constant dense<0.000000e+00> : vector<4xf32>
    %60 = vector.multi_reduction <add>, %59, %cst_21 [1] : vector<4x256xf32> to vector<4xf32>
    %61 = vector.shape_cast %60 : vector<4xf32> to vector<4x1xf32>
    %cst_22 = arith.constant 3.906250e-03 : f32
    %62 = vector.broadcast %cst_22 : f32 to vector<4x1xf32>
    %63 = arith.mulf %58, %62 : vector<4x1xf32>
    %cst_23 = arith.constant 3.906250e-03 : f32
    %64 = vector.broadcast %cst_23 : f32 to vector<4x1xf32>
    %65 = arith.mulf %61, %64 : vector<4x1xf32>
    %66 = arith.mulf %63, %63 : vector<4x1xf32>
    %67 = arith.subf %65, %66 : vector<4x1xf32>
    %cst_24 = arith.constant 0.000000e+00 : f32
    %68 = vector.broadcast %cst_24 : f32 to vector<4x1xf32>
    %69 = arith.maximumf %67, %68 : vector<4x1xf32>
    %70 = vector.broadcast %63 : vector<4x1xf32> to vector<4x256xf32>
    %71 = arith.subf %56, %70 : vector<4x256xf32>
    %cst_25 = arith.constant 9.99999974E-6 : f32
    %72 = vector.broadcast %cst_25 : f32 to vector<4x1xf32>
    %73 = arith.addf %69, %72 : vector<4x1xf32>
    %74 = math.rsqrt %73 : vector<4x1xf32>
    %75 = vector.broadcast %74 : vector<4x1xf32> to vector<4x256xf32>
    %76 = arith.mulf %71, %75 : vector<4x256xf32>
    %cst_26 = arith.constant 0.000000e+00 : f32
    %77 = vector.broadcast %cst_26 : f32 to vector<4x256xf32>
    %78 = arith.maximumf %76, %77 : vector<4x256xf32>
    %c0_27 = arith.constant 0 : index
    %c0_28 = arith.constant 0 : index
    %79 = vector.load %arg3[%c0_27, %c0_28] : memref<12x12xbf16, #tpu.memory_space<vmem>>, vector<12x12xbf16>
    %c1_i32_29 = arith.constant 1 : i32
    %80 = tpu.dynamic_rotate %78 by %c1_i32_29 dim 1 : vector<4x256xf32>, i32 -> vector<4x256xf32>
    %c255_i32_30 = arith.constant 255 : i32
    %81 = tpu.dynamic_rotate %78 by %c255_i32_30 dim 1 : vector<4x256xf32>, i32 -> vector<4x256xf32>
    %82 = vector.shape_cast %20 : vector<1x256xi1> to vector<1x256xi1>
    %83 = vector.broadcast %82 : vector<1x256xi1> to vector<4x256xi1>
    %84 = arith.select %83, %81, %80 : vector<4x256xi1>, vector<4x256xf32>
    %c0_31 = arith.constant 0 : index
    %c0_32 = arith.constant 0 : index
    %85 = vector.load %arg5[%c0_31, %c0_32] : memref<12x256xf32, #tpu.memory_space<vmem>>, vector<4x256xf32>
    tpu.vector_store %arg5[%c0_31, %c0_32], %84 {strides = array<i32>} : memref<12x256xf32, #tpu.memory_space<vmem>>, vector<4x256xf32>,
    %c4_33 = arith.constant 4 : index
    %c0_34 = arith.constant 0 : index
    %86 = vector.load %arg5[%c4_33, %c0_34] : memref<12x256xf32, #tpu.memory_space<vmem>>, vector<4x256xf32>
    tpu.vector_store %arg5[%c4_33, %c0_34], %78 {strides = array<i32>} : memref<12x256xf32, #tpu.memory_space<vmem>>, vector<4x256xf32>,
    %87 = vector.shape_cast %22 : vector<1x256xi1> to vector<1x256xi1>
    %88 = vector.broadcast %87 : vector<1x256xi1> to vector<4x256xi1>
    %89 = arith.select %88, %80, %81 : vector<4x256xi1>, vector<4x256xf32>
    %c8_35 = arith.constant 8 : index
    %c0_36 = arith.constant 0 : index
    %90 = vector.load %arg5[%c8_35, %c0_36] : memref<12x256xf32, #tpu.memory_space<vmem>>, vector<4x256xf32>
    tpu.vector_store %arg5[%c8_35, %c0_36], %89 {strides = array<i32>} : memref<12x256xf32, #tpu.memory_space<vmem>>, vector<4x256xf32>,
    %c0_37 = arith.constant 0 : index
    %c0_38 = arith.constant 0 : index
    %91 = vector.load %arg5[%c0_37, %c0_38] : memref<12x256xf32, #tpu.memory_space<vmem>>, vector<12x256xf32>
    %92 = arith.truncf %91 : vector<12x256xf32> to vector<12x256xbf16>
    %cst_39 = arith.constant dense<0.000000e+00> : vector<12x256xf32>
    %93 = tpu.matmul %79, %92, %cst_39 {dimension_numbers = #tpu.dot_dimension_numbers<[1], [0], [0], [1], [0, 0, 1, 1], [], []>} : vector<12x12xbf16>, vector<12x256xbf16>, vector<12x256xf32> -> vector<12x256xf32>
    %94 = vector.extract_strided_slice %93 {offsets = [0, 0], sizes = [4, 256], strides = [1, 1]} : vector<12x256xf32> to vector<4x256xf32>
    %95 = vector.extract_strided_slice %93 {offsets = [4, 0], sizes = [4, 256], strides = [1, 1]} : vector<12x256xf32> to vector<4x256xf32>
    %96 = vector.extract_strided_slice %93 {offsets = [8, 0], sizes = [4, 256], strides = [1, 1]} : vector<12x256xf32> to vector<4x256xf32>
    %c16_i32_40 = arith.constant 16 : i32
    %97 = tpu.dynamic_rotate %94 by %c16_i32_40 dim 1 : vector<4x256xf32>, i32 -> vector<4x256xf32>
    %c240_i32_41 = arith.constant 240 : i32
    %98 = tpu.dynamic_rotate %94 by %c240_i32_41 dim 1 : vector<4x256xf32>, i32 -> vector<4x256xf32>
    %99 = vector.shape_cast %24 : vector<1x256xi1> to vector<1x256xi1>
    %100 = vector.broadcast %99 : vector<1x256xi1> to vector<4x256xi1>
    %101 = arith.select %100, %98, %97 : vector<4x256xi1>, vector<4x256xf32>
    %102 = arith.addf %95, %101 : vector<4x256xf32>
    %c16_i32_42 = arith.constant 16 : i32
    %103 = tpu.dynamic_rotate %96 by %c16_i32_42 dim 1 : vector<4x256xf32>, i32 -> vector<4x256xf32>
    %c240_i32_43 = arith.constant 240 : i32
    %104 = tpu.dynamic_rotate %96 by %c240_i32_43 dim 1 : vector<4x256xf32>, i32 -> vector<4x256xf32>
    %105 = vector.shape_cast %26 : vector<1x256xi1> to vector<1x256xi1>
    %106 = vector.broadcast %105 : vector<1x256xi1> to vector<4x256xi1>
    %107 = arith.select %106, %103, %104 : vector<4x256xi1>, vector<4x256xf32>
    %108 = arith.addf %102, %107 : vector<4x256xf32>
    %cst_44 = arith.constant dense<0.000000e+00> : vector<4xf32>
    %109 = vector.multi_reduction <add>, %108, %cst_44 [1] : vector<4x256xf32> to vector<4xf32>
    %110 = vector.shape_cast %109 : vector<4xf32> to vector<4x1xf32>
    %111 = arith.mulf %108, %108 : vector<4x256xf32>
    %cst_45 = arith.constant dense<0.000000e+00> : vector<4xf32>
    %112 = vector.multi_reduction <add>, %111, %cst_45 [1] : vector<4x256xf32> to vector<4xf32>
    %113 = vector.shape_cast %112 : vector<4xf32> to vector<4x1xf32>
    %cst_46 = arith.constant 3.906250e-03 : f32
    %114 = vector.broadcast %cst_46 : f32 to vector<4x1xf32>
    %115 = arith.mulf %110, %114 : vector<4x1xf32>
    %cst_47 = arith.constant 3.906250e-03 : f32
    %116 = vector.broadcast %cst_47 : f32 to vector<4x1xf32>
    %117 = arith.mulf %113, %116 : vector<4x1xf32>
    %118 = arith.mulf %115, %115 : vector<4x1xf32>
    %119 = arith.subf %117, %118 : vector<4x1xf32>
    %cst_48 = arith.constant 0.000000e+00 : f32
    %120 = vector.broadcast %cst_48 : f32 to vector<4x1xf32>
    %121 = arith.maximumf %119, %120 : vector<4x1xf32>
    %122 = vector.broadcast %115 : vector<4x1xf32> to vector<4x256xf32>
    %123 = arith.subf %108, %122 : vector<4x256xf32>
    %cst_49 = arith.constant 9.99999974E-6 : f32
    %124 = vector.broadcast %cst_49 : f32 to vector<4x1xf32>
    %125 = arith.addf %121, %124 : vector<4x1xf32>
    %126 = math.rsqrt %125 : vector<4x1xf32>
    %127 = vector.broadcast %126 : vector<4x1xf32> to vector<4x256xf32>
    %128 = arith.mulf %123, %127 : vector<4x256xf32>
    %129 = arith.addf %1, %128 : vector<4x256xf32>
    %c0_50 = arith.constant 0 : index
    %c0_51 = arith.constant 0 : index
    %c0_52 = arith.constant 0 : index
    %130 = vector.load %arg4[%c0_50, %c0_51, %c0_52] : memref<1x4x256xf32, #tpu.memory_space<vmem>>, vector<1x4x256xf32>
    %131 = vector.shape_cast %130 : vector<1x4x256xf32> to vector<4x256xf32>
    %132 = vector.shape_cast %129 : vector<4x256xf32> to vector<1x4x256xf32>
    tpu.vector_store %arg4[%c0_50, %c0_51, %c0_52], %132 {strides = array<i32>} : memref<1x4x256xf32, #tpu.memory_space<vmem>>, vector<1x4x256xf32>,
    return
  }
  func.func @transform_0(%arg0: i32) -> (i32, i32, i32) {
    %c0_i32 = arith.constant 0 : i32
    %c0_i32_0 = arith.constant 0 : i32
    %c0_i32_1 = arith.constant 0 : i32
    return %arg0, %c0_i32, %c0_i32_0 : i32, i32, i32
  }
  func.func @transform_1(%arg0: i32) -> (i32, i32) {
    %c0_i32 = arith.constant 0 : i32
    %c0_i32_0 = arith.constant 0 : i32
    %c0_i32_1 = arith.constant 0 : i32
    return %c0_i32, %c0_i32_0 : i32, i32
  }
  func.func @transform_2(%arg0: i32) -> (i32, i32) {
    %c0_i32 = arith.constant 0 : i32
    %c0_i32_0 = arith.constant 0 : i32
    %c0_i32_1 = arith.constant 0 : i32
    return %c0_i32, %c0_i32_0 : i32, i32
  }
  func.func @transform_3(%arg0: i32) -> (i32, i32, i32) {
    %c0_i32 = arith.constant 0 : i32
    %c0_i32_0 = arith.constant 0 : i32
    %c0_i32_1 = arith.constant 0 : i32
    return %arg0, %c0_i32, %c0_i32_0 : i32, i32, i32
  }
}

</mosaic_0001>

<bundles_post_ra>
// kernel: res_block_forward.1
= control target key start
LH: loop header
LB: loop body
LE: loop exit
PB: predicated region body
PF: predicated region fallthrough
CT: control target
= control target key end

     0   :  { %s685_s12 = smov 0   ;;  %s855_s0 = inlined_call_operand.vmem [shape: f32[2,4,256], index: 0, kind: input, shape index: {}]   ;;  %s856_s1 = inlined_call_operand.vmem [shape: bf16[12,12], index: 1, kind: input, shape index: {}]   ;;  %s857_s2 = inlined_call_operand.vmem [shape: bf16[12,12], index: 2, kind: input, shape index: {}]   ;;  %s858_s3 = inlined_call_operand.vmem [shape: f32[2,4,256], index: 3, kind: output, shape index: {}]  }
   0x1 LB: > { %s612_s13 = sadd.s32 4294967295, %s658_s12   ;;  %p616_p0 = scmp.ge.s32.totalorder %s658_s12, 1  ;;  %s658_s12 = sphi %s685_s12, %s13_s12  }
   0x2   : > { %p137_p1 = scmp.lt.s32.totalorder %s658_s12, 3 }
   0x4   : > { %p138_p2 = pnand %p616_p0, %p137_p1 }
   0x5   : > { %p161_p3 = scmp.lt.s32.totalorder (!%p138_p2), %s612_s13, 1  ;;  %s660_s18 = smov (!%p138_p2), 127   ;;  %v662_v3 = vmov (!%p138_p2), 0   ;;  %v173_v4 = vlaneseq (!%p138_p2)  ;;  %vm262_vm6 = vcmask (!%p138_p2), 1045504   ;;  %v646_v32 = vld [vmem:[%s856_s1] sm:$0x3f] (!%p138_p2)  }
   0x6   : > { %141 = sbr.rel (%p138_p2) target bundleno = 1326 (0x52e), region = 32  ;;  %s661_s19 = smov (!%p138_p2), 1   ;;  %301 = vmatprep.mubr.bf16.mxu0 (!%p138_p2), %v662_v3  ;;  %473 = vmatprep.mubr.bf16.mxu1 (!%p138_p2), %v662_v3  ;;  %vm258_vm7 = vcmask (!%p138_p2), 97280   ;;  %vm365_vm11 = vcmask (!%p138_p2), 1047556   ;;  %v647_v13 = vld [vmem:[%s857_s2] sm:$0x3f] (!%p138_p2)  }
   0x7   : > { %v714_v5 = vand.u32 (!%p138_p2), 127, %v173_v4  ;;  %s663_s22 = smov (!%p138_p2), 16   ;;  %s664_s23 = smov (!%p138_p2), 112  }
   0x9   : > { %v717_v6 = vadd.s32 (!%p138_p2), 128, %v714_v5  ;;  %v180_v7 = vand.u32 (!%p138_p2), 15, %v714_v5  ;;  %vm224_vm0 = vcmp.lt.s32.totalorder (!%p138_p2), %v714_v5, 127  ;;  %vm217_vm1 = vcmp.lt.s32.totalorder (!%p138_p2), %v714_v5, 1 }
   0xa   : > { %vm322_vm8 = vcmp.lt.s32.totalorder (!%p138_p2), %v714_v5, 112  ;;  %vm204_vm9 = vcmp.lt.s32.totalorder (!%p138_p2), %v714_v5, 16 }
   0xb   : > { %v187_v8 = vand.u32 (!%p138_p2), 15, %v717_v6  ;;  %vm723_vm2 = vcmp.eq.s32.totalorder (!%p138_p2), %v180_v7, 0  ;;  %vm731_vm4 = vcmp.eq.s32.totalorder (!%p138_p2), %v180_v7, 15  ;;  %vm207_vm10 = vcmp.ge.s32.totalorder (!%p138_p2), %v717_v6, 240 }
   0xd   : > { %s868_s13 = smov (!%p161_p3, %s612_s13), 1  ;;  %vm727_vm3 = vcmp.eq.s32.totalorder %v187_v8, 0  ;;  %vm735_vm5 = vcmp.eq.s32.totalorder %v187_v8, 15 }
   0xe   : > { %s629_s14 = sshll.u32 %s868_s13, 3 }
   0xf   : > { %s165_s17 = scalar_lea.vmem %s855_s0, %s629_s14  ;;  %s170_s28 = scalar_lea.vmem %s858_s3, %s629_s14 }
  0x10   : > { %v701_v0 = vld [vmem:[%s165_s17] sm:$0xff] }
  0x11   : > { %220 = vrot.lane.b32.xlu1 %v701_v0, %s660_s18  ;;  %v235_v1 = vcombine.low %v701_v0, %v701_v0  ;;  %238 = vst [vmem:[#allocation2 + $0x8] sm:$0xf0] %v701_v0  ;;  %213 = vrot.lane.b32.xlu0 %v701_v0, %s661_s19  ;;  %v211_v2 = vcombine.high %v701_v0, %v701_v0 }
  0x13   : > { %237 = vst [vmem:[#allocation2] sm:$0xf0] %v235_v1 }
  0x15   : > { %222 = vrot.lane.b32.xlu1 %v211_v2, %s660_s18  ;;  %215 = vrot.lane.b32.xlu0 %v211_v2, %s661_s19 }
  0x83   : > { %v221_v9 = vpop.permute.xlu1 %220  ;;  %v214_v10 = vpop.permute.xlu0 %213 }
  0x87   : > { %v223_v15 = vpop.permute.xlu1 %222  ;;  %v216_v16 = vpop.permute.xlu0 %215 }
  0x88   : > { %v225_v17 = vsel %vm224_vm0, %v221_v9, %v223_v15  ;;  %v226_v18 = vsel %vm224_vm0, %v223_v15, %v221_v9  ;;  %v218_v19 = vsel %vm217_vm1, %v214_v10, %v216_v16  ;;  %v219_v20 = vsel %vm217_vm1, %v216_v16, %v214_v10 }
  0x89   : > { %v231_v21 = vsel %vm723_vm2, %v225_v17, %v219_v20  ;;  %v232_v22 = vsel %vm727_vm3, %v226_v18, %v218_v19  ;;  %v243_v23 = vsel %vm731_vm4, %v219_v20, %v225_v17  ;;  %v244_v24 = vsel %vm735_vm5, %v218_v19, %v226_v18 }
  0x8a   : > { %233 = vst [vmem:[#allocation2] sm:$0xf] %v231_v21  ;;  %234 = vst [vmem:[#allocation2 + $0x8] sm:$0xf] %v232_v22 }
  0x8b   : > { %245 = vst [vmem:[#allocation2 + $0x10] sm:$0xf] %v243_v23  ;;  %246 = vst [vmem:[#allocation2 + $0x18] sm:$0xf] %v244_v24 }
  0x91   : > { %v248_v25 = vld [vmem:[#allocation2 + $0x8] sm:$0xff]  ;;  %v247_v27 = vld [vmem:[#allocation2] sm:$0xff] }
  0x92   : > { %v250_v26 = vld [vmem:[#allocation2 + $0x18] sm:$0xf]  ;;  %v249_v29 = vld [vmem:[#allocation2 + $0x10] sm:$0xf] }
  0x93   : > { %v252_v28 = vpack.c.bf16 %v250_v26, %v248_v25  ;;  %v251_v30 = vpack.c.bf16 %v249_v29, %v247_v27 }
  0x95   : > { %622 = vmatprep.subr.msk.bf16.mxu0 %vm262_vm6, %v252_v28  ;;  %v264_v31 = vsel %vm262_vm6, %v251_v30, 0 }
  0x96   : > { %270 = vmatpush1.bf16.msra.mxu0 %v264_v31 }
  0x99   : > { %623 = vmatmul.mubr.msk.bf16.vlgmr.msra.gmra.mrb[0].mxu0 %vm258_vm7, %v646_v32 }
 0x16c   : > { %v303_v33 = vpop.f32.mrb[0].mxu0 }
 0x16d   : > { %312 = vrot.lane.b32.xlu0 %v303_v33, %s663_s22  ;;  %v305_v34 = vpop.f32.mrb[1].mxu0 }
 0x16e   : > { %314 = vrot.lane.b32.xlu1 %v305_v34, %s663_s22  ;;  %v307_v35 = vpop.f32.mrb[2].mxu0 }
 0x16f   : > { %v309_v36 = vpop.f32.mrb[3].mxu0 }
 0x171   : > { %318 = vrot.lane.b32.xlu0 %v303_v33, %s664_s23 }
 0x172   : > { %320 = vrot.lane.b32.xlu1 %v305_v34, %s664_s23 }
 0x175   : > { %339 = vrot.lane.b32.xlu0 %v307_v35, %s663_s22 }
 0x176   : > { %341 = vrot.lane.b32.xlu1 %v309_v36, %s663_s22 }
 0x179   : > { %345 = vrot.lane.b32.xlu0 %v307_v35, %s664_s23 }
 0x17a   : > { %347 = vrot.lane.b32.xlu1 %v309_v36, %s664_s23 }
 0x1df   : > { %v313_v37 = vpop.permute.xlu0 %312 }
 0x1e0   : > { %v315_v38 = vpop.permute.xlu1 %314 }
 0x1e1   : > { %v317_v42 = vsel %vm204_vm9, %v315_v38, %v313_v37  ;;  %v316_v45 = vsel %vm204_vm9, %v313_v37, %v315_v38 }
 0x1e2   : > { %v334_v48 = vrot.slane %v316_v45, 4 }
 0x1e3   : > { %v319_v39 = vpop.permute.xlu0 %318 }
 0x1e4   : > { %v321_v40 = vpop.permute.xlu1 %320  ;;  %v338_v57 = vadd.f32 %v334_v48, %v305_v34 }
 0x1e5   : > { %v323_v41 = vsel %vm322_vm8, %v319_v39, %v321_v40 }
 0x1e6   : > { %v329_v43 = vsel %vm204_vm9, %v323_v41, %v317_v42 }
 0x1e7   : > { %v340_v44 = vpop.permute.xlu0 %339  ;;  %v333_v47 = vrot.slane %v329_v43, 4 }
 0x1e8   : > { %v342_v46 = vpop.permute.xlu1 %341 }
 0x1e9   : > { %v343_v51 = vsel %vm204_vm9, %v340_v44, %v342_v46  ;;  %v337_v54 = vadd.f32 %v333_v47, %v303_v33 }
 0x1eb   : > { %v346_v49 = vpop.permute.xlu0 %345 }
 0x1ec   : > { %v348_v50 = vpop.permute.xlu1 %347 }
 0x1ed   : > { %v349_v52 = vsel %vm322_vm8, %v346_v49, %v348_v50  ;;  %v350_v53 = vsel %vm322_vm8, %v348_v50, %v346_v49 }
 0x1ee   : > { %v356_v55 = vsel %vm207_vm10, %v343_v51, %v350_v53  ;;  %v359_v56 = vrot.slane %v349_v52, 4 }
 0x1ef   : > { %v360_v58 = vrot.slane %v356_v55, 4 }
 0x1f0   : > { %v363_v59 = vadd.f32 %v359_v56, %v337_v54 }
 0x1f1   : > { %v364_v60 = vadd.f32 %v360_v58, %v338_v57 }
 0x1f2   : > { %v366_v61 = vsel %vm365_vm11, %v363_v59, 0.0  ;;  %v371_v62 = vmul.f32 %v363_v59, %v363_v59 }
 0x1f3   : > { %v367_v63 = vsel %vm365_vm11, %v364_v60, 0.0  ;;  %v372_v1 = vmul.f32 %v364_v60, %v364_v60 }
 0x1f4   : > { %v368_v2 = vadd.f32 %v367_v63, %v366_v61  ;;  %v373_v3 = vsel %vm365_vm11, %v371_v62, 0.0 }
 0x1f5   : > { %v374_v4 = vsel %vm365_vm11, %v372_v1, 0.0 }
 0x1f6   : > { %369 = vadd.xlane.f32.xlu0 %v368_v2  ;;  %v375_v7 = vadd.f32 %v374_v4, %v373_v3 }
 0x1f8   : > { %376 = vadd.xlane.f32.xlu1 %v375_v7 }
 0x283   : > { %v370_v8 = vpop.xlane.xlu0 %369 }
 0x284   : > { %v378_v9 = vmul.f32 0.00390625, %v370_v8 }
 0x285   : > { %v377_v10 = vpop.xlane.xlu1 %376 }
 0x286   : > { %v379_v15 = vmul.f32 0.00390625, %v377_v10  ;;  %v380_v16 = vmul.f32 %v378_v9, %v378_v9  ;;  %v383_v20 = vsub.f32 %v363_v59, %v378_v9  ;;  %v384_v21 = vsub.f32 %v364_v60, %v378_v9 }
 0x288   : > { %v381_v17 = vsub.f32 %v379_v15, %v380_v16 }
 0x28a   : > { %v382_v18 = vmax.f32 %v381_v17, 0.0 }
 0x28c   : > { %v385_v19 = vadd.f32 1e-05, %v382_v18 }
 0x28e   : > { %648 = vrsqrt.f32 %v385_v19 }
 0x298   : > { %v649_v22 = vpop.eup %648 }
 0x299   : > { %v388_v23 = vmul.f32 %v649_v22, %v384_v21  ;;  %v387_v24 = vmul.f32 %v649_v22, %v383_v20 }
 0x29b   : > { %v390_v25 = vmax.f32 %v388_v23, 0.0  ;;  %v389_v26 = vmax.f32 %v387_v24, 0.0 }
 0x29d   : > { %v396_v27 = vrot.slane %v390_v25, 4  ;;  %416 = vst [vmem:[#allocation2 + $0x8] sm:$0xf0] %v390_v25  ;;  %v395_v28 = vrot.slane %v389_v26, 4  ;;  %415 = vst [vmem:[#allocation2] sm:$0xf0] %v389_v26 }
 0x29f   : > { %401 = vrot.lane.b32.xlu1 %v396_v27, %s661_s19  ;;  %399 = vrot.lane.b32.xlu0 %v395_v28, %s661_s19 }
 0x2a3   : > { %407 = vrot.lane.b32.xlu1 %v396_v27, %s660_s18  ;;  %405 = vrot.lane.b32.xlu0 %v395_v28, %s660_s18 }
 0x311   : > { %v402_v29 = vpop.permute.xlu1 %401  ;;  %v400_v30 = vpop.permute.xlu0 %399 }
 0x312   : > { %v403_v33 = vsel %vm217_vm1, %v400_v30, %v402_v29  ;;  %v404_v34 = vsel %vm217_vm1, %v402_v29, %v400_v30 }
 0x315   : > { %v408_v31 = vpop.permute.xlu1 %407  ;;  %v406_v32 = vpop.permute.xlu0 %405 }
 0x316   : > { %v409_v35 = vsel %vm224_vm0, %v406_v32, %v408_v31  ;;  %v410_v36 = vsel %vm224_vm0, %v408_v31, %v406_v32 }
 0x317   : > { %v411_v37 = vsel %vm723_vm2, %v409_v35, %v404_v34  ;;  %v412_v38 = vsel %vm727_vm3, %v410_v36, %v403_v33  ;;  %v417_v39 = vsel %vm731_vm4, %v404_v34, %v409_v35  ;;  %v418_v40 = vsel %vm735_vm5, %v403_v33, %v410_v36 }
 0x318   : > { %413 = vst [vmem:[#allocation2] sm:$0xf] %v411_v37  ;;  %414 = vst [vmem:[#allocation2 + $0x8] sm:$0xf] %v412_v38 }
 0x319   : > { %419 = vst [vmem:[#allocation2 + $0x10] sm:$0xf] %v417_v39  ;;  %420 = vst [vmem:[#allocation2 + $0x18] sm:$0xf] %v418_v40 }
 0x31f   : > { %v422_v41 = vld [vmem:[#allocation2 + $0x8] sm:$0xff]  ;;  %v421_v43 = vld [vmem:[#allocation2] sm:$0xff] }
 0x320   : > { %v424_v42 = vld [vmem:[#allocation2 + $0x18] sm:$0xf]  ;;  %v423_v45 = vld [vmem:[#allocation2 + $0x10] sm:$0xf] }
 0x321   : > { %v426_v44 = vpack.c.bf16 %v424_v42, %v422_v41  ;;  %v425_v11 = vpack.c.bf16 %v423_v45, %v421_v43 }
 0x323   : > { %625 = vmatprep.subr.msk.bf16.mxu1 %vm262_vm6, %v426_v44  ;;  %v436_v12 = vsel %vm262_vm6, %v425_v11, 0 }
 0x324   : > { %442 = vmatpush1.bf16.msra.mxu1 %v436_v12 }
 0x327   : > { %626 = vmatmul.mubr.msk.bf16.vlgmr.msra.gmra.mrb[0].mxu1 %vm258_vm7, %v647_v13 }
 0x3fa   : > { %v475_v14 = vpop.f32.mrb[0].mxu1 }
 0x3fb   : > { %484 = vrot.lane.b32.xlu0 %v475_v14, %s663_s22  ;;  %v477_v46 = vpop.f32.mrb[1].mxu1 }
 0x3fc   : > { %486 = vrot.lane.b32.xlu1 %v477_v46, %s663_s22  ;;  %v479_v47 = vpop.f32.mrb[2].mxu1 }
 0x3fd   : > { %v481_v48 = vpop.f32.mrb[3].mxu1 }
 0x3ff   : > { %490 = vrot.lane.b32.xlu0 %v475_v14, %s664_s23 }
 0x400   : > { %492 = vrot.lane.b32.xlu1 %v477_v46, %s664_s23 }
 0x403   : > { %506 = vrot.lane.b32.xlu0 %v479_v47, %s663_s22 }
 0x404   : > { %508 = vrot.lane.b32.xlu1 %v481_v48, %s663_s22 }
 0x407   : > { %512 = vrot.lane.b32.xlu0 %v479_v47, %s664_s23 }
 0x408   : > { %514 = vrot.lane.b32.xlu1 %v481_v48, %s664_s23 }
 0x46d   : > { %v485_v49 = vpop.permute.xlu0 %484 }
 0x46e   : > { %v487_v50 = vpop.permute.xlu1 %486 }
 0x46f   : > { %v489_v54 = vsel %vm204_vm9, %v487_v50, %v485_v49  ;;  %v488_v57 = vsel %vm204_vm9, %v485_v49, %v487_v50 }
 0x470   : > { %v501_v60 = vrot.slane %v488_v57, 4 }
 0x471   : > { %v491_v51 = vpop.permute.xlu0 %490 }
 0x472   : > { %v493_v52 = vpop.permute.xlu1 %492  ;;  %v505_v8 = vadd.f32 %v501_v60, %v477_v46 }
 0x473   : > { %v494_v53 = vsel %vm322_vm8, %v491_v51, %v493_v52 }
 0x474   : > { %v496_v55 = vsel %vm204_vm9, %v494_v53, %v489_v54 }
 0x475   : > { %v507_v56 = vpop.permute.xlu0 %506  ;;  %v500_v59 = vrot.slane %v496_v55, 4 }
 0x476   : > { %v509_v58 = vpop.permute.xlu1 %508 }
 0x477   : > { %v510_v63 = vsel %vm204_vm9, %v507_v56, %v509_v58  ;;  %v504_v3 = vadd.f32 %v500_v59, %v475_v14 }
 0x479   : > { %v513_v61 = vpop.permute.xlu0 %512 }
 0x47a   : > { %v515_v62 = vpop.permute.xlu1 %514 }
 0x47b   : > { %v516_v1 = vsel %vm322_vm8, %v513_v61, %v515_v62  ;;  %v517_v2 = vsel %vm322_vm8, %v515_v62, %v513_v61 }
 0x47c   : > { %v519_v4 = vsel %vm207_vm10, %v510_v63, %v517_v2  ;;  %v522_v7 = vrot.slane %v516_v1, 4 }
 0x47d   : > { %v523_v9 = vrot.slane %v519_v4, 4 }
 0x47e   : > { %v526_v10 = vadd.f32 %v522_v7, %v504_v3 }
 0x47f   : > { %v527_v15 = vadd.f32 %v523_v9, %v505_v8 }
 0x480   : > { %v528_v16 = vsel %vm365_vm11, %v526_v10, 0.0  ;;  %v533_v17 = vmul.f32 %v526_v10, %v526_v10 }
 0x481   : > { %v529_v18 = vsel %vm365_vm11, %v527_v15, 0.0  ;;  %v534_v19 = vmul.f32 %v527_v15, %v527_v15 }
 0x482   : > { %v530_v20 = vadd.f32 %v529_v18, %v528_v16  ;;  %v535_v21 = vsel %vm365_vm11, %v533_v17, 0.0 }
 0x483   : > { %v536_v5 = vsel %vm365_vm11, %v534_v19, 0.0 }
 0x484   : > { %531 = vadd.xlane.f32.xlu0 %v530_v20  ;;  %v537_v22 = vadd.f32 %v536_v5, %v535_v21 }
 0x486   : > { %538 = vadd.xlane.f32.xlu1 %v537_v22 }
 0x511   : > { %v532_v6 = vpop.xlane.xlu0 %531 }
 0x512   : > { %v540_v23 = vmul.f32 0.00390625, %v532_v6 }
 0x513   : > { %v539_v24 = vpop.xlane.xlu1 %538 }
 0x514   : > { %v541_v25 = vmul.f32 0.00390625, %v539_v24  ;;  %v542_v26 = vmul.f32 %v540_v23, %v540_v23  ;;  %v545_v30 = vsub.f32 %v526_v10, %v540_v23  ;;  %v546_v31 = vsub.f32 %v527_v15, %v540_v23 }
 0x516   : > { %v543_v27 = vsub.f32 %v541_v25, %v542_v26 }
 0x518   : > { %v544_v28 = vmax.f32 %v543_v27, 0.0 }
 0x51a   : > { %v547_v29 = vadd.f32 1e-05, %v544_v28 }
 0x51c   : > { %650 = vrsqrt.f32 %v547_v29 }
 0x526   : > { %v651_v32 = vpop.eup %650 }
 0x527   : > { %v549_v33 = vmul.f32 %v651_v32, %v545_v30  ;;  %v550_v34 = vmul.f32 %v651_v32, %v546_v31 }
 0x529   : > { %v553_v35 = vcombine.high %v549_v33, %v550_v34 }
 0x52b   : > { %v555_v36 = vadd.f32 %v553_v35, %v701_v0 }
 0x52d   : > { %556 = vst [vmem:[%s170_s28] sm:$0xff] %v555_v36 }
 0x52e PF: > { %s13_s12 = sadd.s32 1, %s658_s12  }
 0x52f   : > { %p10_p4 = scmp.ge.s32.totalorder %s13_s12, 4  }
 0x531   :  { %12 = sbr.rel (!%p10_p4) target bundleno = 1 (0x1), region = 62 }

</bundles_post_ra>
